<compile_context>
chip_gen: v7x
topology: tpu7x:2x2x1
jax: 0.10.0
libtpu: 0.0.40
codegen_flags: <defaults>
</compile_context>

<pallas_src>
import jax
import jax.numpy as jnp
from jax.experimental import pallas as pl
from jax.experimental.pallas import tpu as pltpu


def _round_up(x, m):
    return (x + m - 1) // m * m


# ---------------------------------------------------------------------------
# Pallas kernel.  Grid = (Hp // TH,).  All D domains handled inside one grid
# step: per-domain matmul (f32 accumulation) + bias + tanh, summed in an f32
# register, stored once as a lane-dense (Bp, TH) tile.
# ---------------------------------------------------------------------------
def goal_encoder_kernel(g_ref, w_ref, b_ref, out_ref):
    # g_ref:   (D, Bp, Vp)  compute dtype (resident, fetched once)
    # w_ref:   (D, Vp, TH)  compute dtype
    # b_ref:   (D, 1,  TH)  f32
    # out_ref: (Bp, TH)     f32
    D = g_ref.shape[0]
    acc = jnp.zeros(out_ref.shape, jnp.float32)
    for d in range(D):  # static unroll: D is a small, static module config
        y = jnp.dot(g_ref[d], w_ref[d], preferred_element_type=jnp.float32)
        acc = acc + jnp.tanh(y + b_ref[d])
    out_ref[...] = acc.astype(out_ref.dtype)


# ---------------------------------------------------------------------------
# One-time parameter packing (hoisted out of the forward path).
#   weights[d]: (nhid, V_d)  (PyTorch Linear layout)  ->  (D, Vp, Hp)
#   biases[d]:  (nhid,)                               ->  (D, 1,  Hp) f32
# ---------------------------------------------------------------------------
def pack_goal_encoder_params(weights, biases, *, compute_dtype=jnp.bfloat16):
    D = len(weights)
    nhid = weights[0].shape[0]
    Vp = _round_up(max(w.shape[1] for w in weights), 8)   # sublane multiple only
    Hp = _round_up(nhid, 128)                              # lane multiple

    w_packed = jnp.stack([
        jnp.pad(weights[d].T.astype(jnp.float32),
                ((0, Vp - weights[d].shape[1]), (0, Hp - nhid)))
        for d in range(D)
    ]).astype(compute_dtype)                               # (D, Vp, Hp)

    b_packed = jnp.stack([
        jnp.pad(biases[d].astype(jnp.float32), (0, Hp - nhid)).reshape(1, Hp)
        for d in range(D)
    ])                                                     # (D, 1, Hp) f32

    return {
        "w": w_packed,
        "b": b_packed,
        "nhid": int(nhid),
        "Vp": int(Vp),
        "Hp": int(Hp),
        "vocab_sizes": tuple(int(w.shape[1]) for w in weights),
    }


# ---------------------------------------------------------------------------
# Forward: pad/stack the (small) goals, call the fused kernel, slice padding.
# ---------------------------------------------------------------------------
def task_mlp_goal_encoder_forward(goals_list, packed, *, tile_h=256):
    D = len(goals_list)
    B = goals_list[0].shape[0]
    nhid, Vp, Hp = packed["nhid"], packed["Vp"], packed["Hp"]
    w, b = packed["w"], packed["b"]
    compute_dtype = w.dtype
    assert w.shape[0] == D

    Bp = _round_up(max(B, 1), 8)                           # sublane multiple
    TH = min(tile_h, Hp)
    if Hp % TH != 0:
        TH = 128                                           # 128 always divides Hp

    # Goals: (D, Bp, Vp), zero-padded (zero cols x weight rows contribute 0;
    # padded batch rows are sliced off below).
    g = jnp.stack([
        jnp.pad(goals_list[d].astype(jnp.float32),
                ((0, Bp - B), (0, Vp - goals_list[d].shape[1])))
        for d in range(D)
    ]).astype(compute_dtype)

    itemsize = jnp.dtype(compute_dtype).itemsize

    # Cost estimate from TRUE (unpadded) dims; bytes from actual DMA traffic.
    cost = pl.CostEstimate(
        flops=int(2 * B * sum(packed["vocab_sizes"]) * nhid),
        transcendentals=int(D * B * nhid),
        bytes_accessed=int(g.size * itemsize + w.size * itemsize
                           + b.size * 4 + Bp * Hp * 4),
    )

    # Raise the scoped VMEM limit only if the resident working set needs it.
    vmem_needed = (D * Bp * Vp * itemsize          # goals (single-buffered, resident)
                   + 2 * D * Vp * TH * itemsize    # weight tiles (double-buffered)
                   + 2 * D * TH * 4                # bias tiles
                   + 2 * Bp * TH * 4)              # output tiles
    extra = {}
    if int(vmem_needed * 1.5) > (32 << 20):
        extra["vmem_limit_bytes"] = min(int(vmem_needed * 1.5), 96 << 20)

    out_padded = pl.pallas_call(
        goal_encoder_kernel,
        out_shape=jax.ShapeDtypeStruct((Bp, Hp), jnp.float32),
        grid_spec=pltpu.PrefetchScalarGridSpec(
            num_scalar_prefetch=0,
            grid=(Hp // TH,),
            in_specs=[
                # goals: full (D, Bp, Vp) block, constant index -> fetched once
                pl.BlockSpec((D, Bp, Vp), lambda h: (0, 0, 0)),
                # weights: (D, Vp, TH) nhid-tile
                pl.BlockSpec((D, Vp, TH), lambda h: (0, 0, h)),
                # bias: (D, 1, TH) nhid-tile
                pl.BlockSpec((D, 1, TH), lambda h: (0, 0, h)),
            ],
            out_specs=pl.BlockSpec((Bp, TH), lambda h: (0, h)),
        ),
        compiler_params=pltpu.CompilerParams(
            dimension_semantics=("parallel",),
            **extra,
        ),
        cost_estimate=cost,
    )(g, w, b)

    return out_padded[:B, :nhid]


# ---------------------------------------------------------------------------
# Pure-JAX reference (mirrors the PyTorch module exactly, f32 throughout)
# ---------------------------------------------------------------------------
def task_mlp_goal_encoder_reference(goals_list, weights, biases):
    outs = [
        jnp.tanh(goal.astype(jnp.float32) @ w.T.astype(jnp.float32) + b)
        for goal, w, b in zip(goals_list, weights, biases)
    ]
    return jnp.sum(jnp.stack(outs), axis=0)


# ---------------------------------------------------------------------------
if __name__ == "__main__":
    # Small config consistent with TaskMlpGoalEncoder(goal_vocab_sizes, nhid,
    # init_range): three domains of differing goal-vocab size, nhid=32.
    goal_vocab_sizes = [6, 10, 16]
    nhid = 32
    init_range = 0.1
    B = 2

    key = jax.random.PRNGKey(0)
    keys = jax.random.split(key, 2 * len(goal_vocab_sizes) + 1)

    weights, biases, goals_list = [], [], []
    for i, v_size in enumerate(goal_vocab_sizes):
        w = jax.random.uniform(keys[2 * i], (nhid, v_size), jnp.float32,
                               minval=-init_range, maxval=init_range)
        weights.append(w)
        biases.append(jnp.zeros((nhid,), jnp.float32))   # module fills bias with 0
        # goals are small non-negative counts in the original task
        goals_list.append(
            jax.random.randint(keys[2 * i + 1], (B, v_size), 0, 6).astype(jnp.float32)
        )

    ref = task_mlp_goal_encoder_reference(goals_list, weights, biases)

    # 1) f32 path: tight numerical check against the reference.
    packed_f32 = pack_goal_encoder_params(weights, biases, compute_dtype=jnp.float32)
    out_f32 = jax.block_until_ready(
        task_mlp_goal_encoder_forward(goals_list, packed_f32))
    assert out_f32.shape == (B, nhid)
    assert jnp.allclose(out_f32, ref, atol=1e-5, rtol=1e-5)

    # 2) bf16 path (default, per perf feedback): bf16 MXU operands, f32
    #    accumulation / bias / tanh -> compare with bf16-appropriate tolerance.
    packed_bf16 = pack_goal_encoder_params(weights, biases, compute_dtype=jnp.bfloat16)
    out_bf16 = jax.block_until_ready(
        task_mlp_goal_encoder_forward(goals_list, packed_bf16))
    assert out_bf16.shape == (B, nhid)
    assert jnp.allclose(out_bf16, ref, atol=5e-2, rtol=5e-2)

    print("KERNEL_OK")
</pallas_src>

<mosaic_0001>
module attributes {stable_mosaic.version = 11 : i64} {
  func.func @goal_encoder_kernel(%arg0: i32, %arg1: memref<3x8x16xf32, #tpu.memory_space<vmem>>, %arg2: memref<3x16x128xf32, #tpu.memory_space<vmem>>, %arg3: memref<3x1x128xf32, #tpu.memory_space<vmem>>, %arg4: memref<8x128xf32, #tpu.memory_space<vmem>>) attributes {dimension_semantics = [#tpu.dimension_semantics<parallel>], iteration_bounds = array<i64: 1>, scalar_prefetch = 0 : i64, scratch_operands = 0 : i64, tpu.core_type = #tpu.core_type<tc>, window_params = [{pipeline_mode = #tpu.pipeline_mode<synchronous>, transform_indices = @transform_0, window_bounds = array<i64: 3, 8, 16>}, {transform_indices = @transform_1, window_bounds = array<i64: 3, 16, 128>}, {transform_indices = @transform_2, window_bounds = array<i64: 3, 1, 128>}, {transform_indices = @transform_3, window_bounds = array<i64: 8, 128>}]} {
    %cst = arith.constant 0.000000e+00 : f32
    %0 = vector.broadcast %cst : f32 to vector<8x128xf32>
    %c0 = arith.constant 0 : index
    %c0_0 = arith.constant 0 : index
    %c0_1 = arith.constant 0 : index
    %1 = vector.load %arg1[%c0, %c0_0, %c0_1] : memref<3x8x16xf32, #tpu.memory_space<vmem>>, vector<1x8x16xf32>
    %2 = vector.shape_cast %1 : vector<1x8x16xf32> to vector<8x16xf32>
    %c0_2 = arith.constant 0 : index
    %c0_3 = arith.constant 0 : index
    %c0_4 = arith.constant 0 : index
    %3 = vector.load %arg2[%c0_2, %c0_3, %c0_4] : memref<3x16x128xf32, #tpu.memory_space<vmem>>, vector<1x16x128xf32>
    %4 = vector.shape_cast %3 : vector<1x16x128xf32> to vector<16x128xf32>
    %cst_5 = arith.constant dense<0.000000e+00> : vector<8x128xf32>
    %5 = tpu.matmul %2, %4, %cst_5 {dimension_numbers = #tpu.dot_dimension_numbers<[1], [0], [0], [1], [0, 0, 1, 1], [], []>} : vector<8x16xf32>, vector<16x128xf32>, vector<8x128xf32> -> vector<8x128xf32>
    %c0_6 = arith.constant 0 : index
    %c0_7 = arith.constant 0 : index
    %c0_8 = arith.constant 0 : index
    %6 = vector.load %arg3[%c0_6, %c0_7, %c0_8] : memref<3x1x128xf32, #tpu.memory_space<vmem>>, vector<1x1x128xf32>
    %7 = vector.shape_cast %6 : vector<1x1x128xf32> to vector<1x128xf32>
    %8 = vector.broadcast %7 : vector<1x128xf32> to vector<8x128xf32>
    %9 = arith.addf %5, %8 : vector<8x128xf32>
    %10 = math.tanh %9 : vector<8x128xf32>
    %11 = arith.addf %0, %10 : vector<8x128xf32>
    %c1 = arith.constant 1 : index
    %c0_9 = arith.constant 0 : index
    %c0_10 = arith.constant 0 : index
    %12 = vector.load %arg1[%c1, %c0_9, %c0_10] : memref<3x8x16xf32, #tpu.memory_space<vmem>>, vector<1x8x16xf32>
    %13 = vector.shape_cast %12 : vector<1x8x16xf32> to vector<8x16xf32>
    %c1_11 = arith.constant 1 : index
    %c0_12 = arith.constant 0 : index
    %c0_13 = arith.constant 0 : index
    %14 = vector.load %arg2[%c1_11, %c0_12, %c0_13] : memref<3x16x128xf32, #tpu.memory_space<vmem>>, vector<1x16x128xf32>
    %15 = vector.shape_cast %14 : vector<1x16x128xf32> to vector<16x128xf32>
    %cst_14 = arith.constant dense<0.000000e+00> : vector<8x128xf32>
    %16 = tpu.matmul %13, %15, %cst_14 {dimension_numbers = #tpu.dot_dimension_numbers<[1], [0], [0], [1], [0, 0, 1, 1], [], []>} : vector<8x16xf32>, vector<16x128xf32>, vector<8x128xf32> -> vector<8x128xf32>
    %c1_15 = arith.constant 1 : index
    %c0_16 = arith.constant 0 : index
    %c0_17 = arith.constant 0 : index
    %17 = vector.load %arg3[%c1_15, %c0_16, %c0_17] : memref<3x1x128xf32, #tpu.memory_space<vmem>>, vector<1x1x128xf32>
    %18 = vector.shape_cast %17 : vector<1x1x128xf32> to vector<1x128xf32>
    %19 = vector.broadcast %18 : vector<1x128xf32> to vector<8x128xf32>
    %20 = arith.addf %16, %19 : vector<8x128xf32>
    %21 = math.tanh %20 : vector<8x128xf32>
    %22 = arith.addf %11, %21 : vector<8x128xf32>
    %c2 = arith.constant 2 : index
    %c0_18 = arith.constant 0 : index
    %c0_19 = arith.constant 0 : index
    %23 = vector.load %arg1[%c2, %c0_18, %c0_19] : memref<3x8x16xf32, #tpu.memory_space<vmem>>, vector<1x8x16xf32>
    %24 = vector.shape_cast %23 : vector<1x8x16xf32> to vector<8x16xf32>
    %c2_20 = arith.constant 2 : index
    %c0_21 = arith.constant 0 : index
    %c0_22 = arith.constant 0 : index
    %25 = vector.load %arg2[%c2_20, %c0_21, %c0_22] : memref<3x16x128xf32, #tpu.memory_space<vmem>>, vector<1x16x128xf32>
    %26 = vector.shape_cast %25 : vector<1x16x128xf32> to vector<16x128xf32>
    %cst_23 = arith.constant dense<0.000000e+00> : vector<8x128xf32>
    %27 = tpu.matmul %24, %26, %cst_23 {dimension_numbers = #tpu.dot_dimension_numbers<[1], [0], [0], [1], [0, 0, 1, 1], [], []>} : vector<8x16xf32>, vector<16x128xf32>, vector<8x128xf32> -> vector<8x128xf32>
    %c2_24 = arith.constant 2 : index
    %c0_25 = arith.constant 0 : index
    %c0_26 = arith.constant 0 : index
    %28 = vector.load %arg3[%c2_24, %c0_25, %c0_26] : memref<3x1x128xf32, #tpu.memory_space<vmem>>, vector<1x1x128xf32>
    %29 = vector.shape_cast %28 : vector<1x1x128xf32> to vector<1x128xf32>
    %30 = vector.broadcast %29 : vector<1x128xf32> to vector<8x128xf32>
    %31 = arith.addf %27, %30 : vector<8x128xf32>
    %32 = math.tanh %31 : vector<8x128xf32>
    %33 = arith.addf %22, %32 : vector<8x128xf32>
    %c0_27 = arith.constant 0 : index
    %c0_28 = arith.constant 0 : index
    %34 = vector.load %arg4[%c0_27, %c0_28] : memref<8x128xf32, #tpu.memory_space<vmem>>, vector<8x128xf32>
    tpu.vector_store %arg4[%c0_27, %c0_28], %33 {strides = array<i32>} : memref<8x128xf32, #tpu.memory_space<vmem>>, vector<8x128xf32>,
    return
  }
  func.func @transform_0(%arg0: i32) -> (i32, i32, i32) {
    %c0_i32 = arith.constant 0 : i32
    %c0_i32_0 = arith.constant 0 : i32
    %c0_i32_1 = arith.constant 0 : i32
    %c0_i32_2 = arith.constant 0 : i32
    return %c0_i32, %c0_i32_0, %c0_i32_1 : i32, i32, i32
  }
  func.func @transform_1(%arg0: i32) -> (i32, i32, i32) {
    %c0_i32 = arith.constant 0 : i32
    %c0_i32_0 = arith.constant 0 : i32
    %c0_i32_1 = arith.constant 0 : i32
    return %c0_i32, %c0_i32_0, %arg0 : i32, i32, i32
  }
  func.func @transform_2(%arg0: i32) -> (i32, i32, i32) {
    %c0_i32 = arith.constant 0 : i32
    %c0_i32_0 = arith.constant 0 : i32
    %c0_i32_1 = arith.constant 0 : i32
    return %c0_i32, %c0_i32_0, %arg0 : i32, i32, i32
  }
  func.func @transform_3(%arg0: i32) -> (i32, i32) {
    %c0_i32 = arith.constant 0 : i32
    %c0_i32_0 = arith.constant 0 : i32
    return %c0_i32, %arg0 : i32, i32
  }
}

</mosaic_0001>

<bundles_post_ra>
// kernel: tpu_custom_call.1
= control target key start
LH: loop header
LB: loop body
LE: loop exit
PB: predicated region body
PF: predicated region fallthrough
CT: control target
= control target key end

     0   :  { %8 = vsyncpa [#allocation3], 0  ;;  %s531_s0 = inlined_call_operand.hbm [shape: f32[3,8,16], index: 0, kind: input, shape index: {}]   ;;  %s532_s1 = inlined_call_operand.hbm [shape: f32[3,16,128], index: 1, kind: input, shape index: {}]   ;;  %s533_s2 = inlined_call_operand.vmem [shape: f32[3,1,128], index: 2, kind: input, shape index: {}]   ;;  %s534_s3 = inlined_call_operand.hbm [shape: f32[8,128], index: 3, kind: output, shape index: {}]  }
   0x1   :  { %9 = vsyncpa [#allocation6], 0 }
   0x2   :  { %10 = vsyncpa [#allocation4], 0  ;;  %s455_s12 = smov [#allocation2]   ;;  %s383_s16 = scalar_lea.hbm %s531_s0, 384 }
   0x3   :  { %s16_s13 = sshll.u32 %s455_s12, 4  ;;  %p384_p0 = scmp.ne.s32.totalorder %s531_s0, %s383_s16  ;;  %s17_s13 = int_to_ptr.vmem [resolvable:$true] %s16_s13 }
   0x4   :  { %p387_p1 = scmp.lt.u32.totalorder %s383_s16, %s531_s0 }
   0x6   :  { %p389_p2 = pnand %p387_p1, %p384_p0 }
   0x8   :  { %392 = shalt.err (!%p389_p2)
}
   0x9   :  { %s393_s21 = scalar_lea.vmem %s17_s13, 384  ;;  %p398_p4 = scmp.lt.s32.totalorder %s17_s13, %s17_s13 }
   0xa   :  { %p394_p3 = scmp.ne.s32.totalorder %s17_s13, %s393_s21  ;;  %p399_p5 = scmp.lt.s32.totalorder %s393_s21, %s393_s21 }
   0xc   :  { %p400_p6 = por %p399_p5, %p398_p4 }
   0xe   :  { %p401_p7 = pnand %p400_p6, %p394_p3 }
  0x10   :  { %404 = shalt.err (!%p401_p7)
}
  0x11   :  { %s456_s22 = smov 128   ;;  %s457_s23 = smov 8  }
  0x12   :  { %22 = dma.hbm_to_vmem [thread:$0]  %s531_s0, 384, %s17_s13, [#allocation3], %s456_s22, %s456_s22, %s457_s23  }
  0x13   :  { %s458_s26 = smov [#allocation5]   ;;  %s405_s30 = scalar_lea.hbm %s532_s1, 768 }
  0x14   :  { %s28_s27 = sshll.u32 %s458_s26, 4  ;;  %p406_p8 = scmp.ne.s32.totalorder %s532_s1, %s405_s30  ;;  %s29_s27 = int_to_ptr.vmem [resolvable:$true] %s28_s27 }
  0x15   :  { %p409_p9 = scmp.lt.u32.totalorder %s405_s30, %s532_s1 }
  0x17   :  { %p411_p10 = pnand %p409_p9, %p406_p8 }
  0x19   :  { %414 = shalt.err (!%p411_p10)
}
  0x1a   :  { %s415_s8 = scalar_lea.vmem %s29_s27, 768  ;;  %p420_p12 = scmp.lt.s32.totalorder %s29_s27, %s29_s27 }
  0x1b   :  { %p416_p11 = scmp.ne.s32.totalorder %s29_s27, %s415_s8  ;;  %p421_p13 = scmp.lt.s32.totalorder %s415_s8, %s415_s8 }
  0x1d   :  { %p422_p0 = por %p421_p13, %p420_p12 }
  0x1f   :  { %p423_p1 = pnand %p422_p0, %p416_p11 }
  0x21   :  { %426 = shalt.err (!%p423_p1)
}
  0x22   :  { %34 = dma.hbm_to_vmem [thread:$0]  %s532_s1, 768, %s29_s27, [#allocation6], %s456_s22, %s456_s22, %s457_s23  }
  0x23   :  { %449 = dma.done.wait [#allocation3], 384  }
  0x24   :  { %450 = vsyncadd [#allocation3], 4294966912 }
  0x25   :  { %451 = dma.done.wait [#allocation6], 768  }
  0x26   :  { %452 = vsyncadd [#allocation6], 4294966528  ;;  %v459_v0 = vmov 0.0|0.0   ;;  %vm460_vm0 = vmmov 0   ;;  %v461_v1 = vmov 0.0   ;;  %v44_v2 = vld [vmem:[#allocation5] sm:$0xff] }
  0x27   :  { %360 = vmatprep.subr.bf16.mxu0 %v459_v0  ;;  %363 = vmatprep.subr.bf16.mxu1 %v459_v0  ;;  %v45_v3 = vld [vmem:[#allocation5 + $0x8] sm:$0xff]  ;;  %v132_v4 = vld [vmem:[#allocation5 + $0x10] sm:$0xff]  ;;  %v133_v6 = vld [vmem:[#allocation5 + $0x18] sm:$0xff]  ;;  %vm53_vm1 = vcmask 130048   ;;  %s462_s15 = smov [#allocation7]  }
  0x28   :  { %343 = vmatprep.mubr.msk.f32.mxu0 %vm460_vm0, %v461_v1  ;;  %350 = vmatprep.mubr.msk.f32.mxu1 %vm460_vm0, %v461_v1  ;;  %v361_v5 = vpack.c.bf16 %v45_v3, %v44_v2  ;;  %v364_v7 = vpack.c.bf16 %v133_v6, %v132_v4  ;;  %v220_v8 = vld [vmem:[#allocation5 + $0x20] sm:$0xff]  ;;  %v221_v9 = vld [vmem:[#allocation5 + $0x28] sm:$0xff]  ;;  %v130_v12 = vld [vmem:[#allocation2 + $0x8] sm:$0xff]  ;;  %s312_s16 = sshll.u32 %s462_s15, 4  ;;  %s313_s16 = int_to_ptr.vmem [resolvable:$true] %s312_s16 }
  0x29   :  { %v43_v10 = vld [vmem:[#allocation2] sm:$0xff]  ;;  %v367_v11 = vpack.c.bf16 %v221_v9, %v220_v8  ;;  %v218_v13 = vld [vmem:[#allocation2 + $0x10] sm:$0xff]  ;;  %s427_s17 = scalar_lea.vmem %s313_s16, 128  ;;  %p432_p3 = scmp.lt.s32.totalorder %s313_s16, %s313_s16 }
  0x2a   :  { %362 = vmatpush3.bf16.msra.mxu0 %v361_v5  ;;  %365 = vmatpush3.bf16.msra.mxu1 %v364_v7  ;;  %v322_v14 = vld [vmem:[%s533_s2] ss:$0 sm:$0xff]  ;;  %v325_v15 = vld [vmem:[%s533_s2 + $0x1] ss:$0 sm:$0xff]  ;;  %v328_v22 = vld [vmem:[%s533_s2 + $0x2] ss:$0 sm:$0xff]  ;;  %p428_p2 = scmp.ne.s32.totalorder %s313_s16, %s427_s17  ;;  %p433_p4 = scmp.lt.s32.totalorder %s427_s17, %s427_s17 }
  0x2b   :  { %366 = vmatprep.subr.bf16.mxu0 %v459_v0 }
  0x2c   :  { %p434_p5 = por %p433_p4, %p432_p3 }
  0x2d   :  { %344 = vmatmul.mubr.msk.f32.vlgmr.msra.gmra.mrb[0].mxu0 %vm53_vm1, %v43_v10  ;;  %351 = vmatmul.mubr.msk.f32.vlgmr.msra.gmra.mrb[0].mxu1 %vm53_vm1, %v130_v12 }
  0x2e   :  { %368 = vmatpush3.bf16.msra.mxu0 %v367_v11  ;;  %357 = vmatprep.mubr.msk.f32.mxu0 %vm460_vm0, %v461_v1  ;;  %p435_p6 = pnand %p434_p5, %p428_p2 }
  0x31   :  { %358 = vmatmul.mubr.msk.f32.vlgmr.msra.gmra.mrb[2].mxu0 %vm53_vm1, %v218_v13 }
 0x100   :  { %v123_v16 = vpop.f32.mrb[0].mxu0  ;;  %v211_v19 = vpop.f32.mrb[0].mxu1 }
 0x101   :  { %v124_v17 = vadd.f32 %v322_v14, %v123_v16  ;;  %v345_v18 = vpop.f32.mrb[1].mxu0  ;;  %v212_v20 = vadd.f32 %v325_v15, %v211_v19  ;;  %v352_v21 = vpop.f32.mrb[1].mxu1 }
 0x103   :  { %377 = vtanh.f32 %v124_v17 }
 0x104   :  { %379 = vtanh.f32 %v212_v20  ;;  %v299_v23 = vpop.f32.mrb[2].mxu0 }
 0x105   :  { %v300_v24 = vadd.f32 %v328_v22, %v299_v23  ;;  %v359_v25 = vpop.f32.mrb[3].mxu0 }
 0x107   :  { %381 = vtanh.f32 %v300_v24 }
 0x10d   :  { %v378_v26 = vpop.eup %377 }
 0x10e   :  { %v380_v27 = vpop.eup %379 }
 0x10f   :  { %v216_v28 = vadd.f32 %v380_v27, %v378_v26 }
 0x111   :  { %v382_v29 = vpop.eup %381 }
 0x112   :  { %v304_v30 = vadd.f32 %v382_v29, %v216_v28 }
 0x114   :  { %305 = vst [vmem:[#allocation7] sm:$0xff] %v304_v30 }
 0x115   :  { %438 = shalt.err (!%p435_p6)
}
 0x116   :  { %s439_s19 = scalar_lea.hbm %s534_s3, 128 }
 0x117   :  { %p440_p7 = scmp.ne.s32.totalorder %s534_s3, %s439_s19  ;;  %p443_p8 = scmp.lt.u32.totalorder %s439_s19, %s534_s3 }
 0x119   :  { %p445_p9 = pnand %p443_p8, %p440_p7 }
 0x11b   :  { %448 = shalt.err (!%p445_p9)
}
 0x11c   :  { %315 = dma.vmem_to_hbm [thread:$0]  %s313_s16, 128, %s534_s3, [#allocation4]  }
 0x11d   :  { %453 = dma.done.wait [#allocation4], 128  }
 0x11e   :  { %454 = vsyncadd [#allocation4], 4294967168 }
 0x11f   :  { %319 = vsyncpa [#allocation3], 1 }
 0x120   :  { %320 = vsyncpa [#allocation6], 1 }
 0x121   :  { %321 = vsyncpa [#allocation4], 1 }

</bundles_post_ra>
